<compile_context>
chip_gen: v7x
topology: tpu7x:2x2x1
jax: 0.10.0
libtpu: 0.0.40
codegen_flags: <defaults>
</compile_context>

<pallas_src>
import functools
import math

import jax
import jax.numpy as jnp
from jax import lax
from jax.experimental import pallas as pl
from jax.experimental.pallas import tpu as pltpu


def net_kernel(tok_ref, emb_ref, wx_ref, wh_ref, bg_ref,
               w1_ref, b1_ref, w2_ref, b2_ref, out_ref, *, seq_len, batch):
    """tok_ref: (T*B, 1) int32 flattened time-major token ids (VMEM)
    emb_ref: (V, E) embedding table
    wx_ref: (E, 4H), wh_ref: (H, 4H), bg_ref: (1, 4H)  (gate order i, f, c~, o)
    w1_ref: (H, H), b1_ref: (1, H), w2_ref: (H, Cp), b2_ref: (1, Cp)
    out_ref: (B, Cp) lane-dense logits slab."""
    H = wh_ref.shape[0]
    V = emb_ref.shape[0]
    rows = seq_len * batch

    # Fused embedding gather + hoisted input projection:
    #   x      = onehot(tok) @ emb
    #   xproj  = x @ Wx + bg  ==  onehot(tok) @ (emb @ Wx) + bg
    # Two tiny MXU matmuls, no dynamic-index gather, result stays in vregs.
    emb_wx = jnp.dot(emb_ref[...], wx_ref[...],
                     preferred_element_type=jnp.float32)            # (V, 4H)
    tok = tok_ref[...]                                              # (T*B, 1)
    onehot = (lax.broadcasted_iota(jnp.int32, (rows, V), 1)
              == tok).astype(jnp.float32)                           # (T*B, V)
    xproj = (jnp.dot(onehot, emb_wx, preferred_element_type=jnp.float32)
             + bg_ref[...])                                         # (T*B, 4H)

    wh = wh_ref[...]                                                # (H, 4H)
    h = jnp.zeros((batch, H), jnp.float32)
    c = jnp.zeros((batch, H), jnp.float32)

    # Fully unrolled recurrence (T static, small): xproj sliced with static,
    # sublane-aligned offsets; h/c live in vregs for the whole chain.
    for t in range(seq_len):
        gates = (xproj[t * batch:(t + 1) * batch, :]
                 + jnp.dot(h, wh, preferred_element_type=jnp.float32))
        # One EUP sigmoid over the full (batch, 4H) vreg; tanh only on c~.
        sig = jax.nn.sigmoid(gates)
        i_t = sig[:, 0 * H:1 * H]
        f_t = sig[:, 1 * H:2 * H]
        g_t = jnp.tanh(gates[:, 2 * H:3 * H])
        o_t = sig[:, 3 * H:4 * H]
        c = f_t * c + i_t * g_t
        h = o_t * jnp.tanh(c)

    hidden = jnp.maximum(
        jnp.dot(h, w1_ref[...], preferred_element_type=jnp.float32)
        + b1_ref[...], 0.0)
    out_ref[...] = (
        jnp.dot(hidden, w2_ref[...], preferred_element_type=jnp.float32)
        + b2_ref[...])


def prepare_params(params, lane=128):
    """One-time prep: pad the classifier to a lane-dense output width."""
    C = params["w2"].shape[-1]
    C_pad = max(lane, ((C + lane - 1) // lane) * lane)
    out = dict(params)
    out["w2"] = jnp.pad(params["w2"], ((0, 0), (0, C_pad - C)))
    out["b2"] = jnp.pad(params["b2"], ((0, 0), (0, C_pad - C)))
    return out


def net_forward(tokens, params, *, num_classes):
    """tokens: (B, T) int32; params from prepare_params(). Returns (B, C)."""
    B, T = tokens.shape
    C_pad = params["w2"].shape[-1]          # already lane-padded

    B_pad = max(8, ((B + 7) // 8) * 8)      # sublane-dense batch
    # Flattened time-major token ids; padded batch rows use token 0 and are
    # sliced off after the kernel.
    tok_p = jnp.pad(tokens, ((0, B_pad - B), (0, 0)))
    tok_flat = jnp.transpose(tok_p).reshape(T * B_pad, 1).astype(jnp.int32)

    kern = functools.partial(net_kernel, seq_len=T, batch=B_pad)
    n_in = 9
    out = pl.pallas_call(
        kern,
        out_shape=jax.ShapeDtypeStruct((B_pad, C_pad), jnp.float32),
        in_specs=[pl.BlockSpec(memory_space=pltpu.MemorySpace.VMEM)] * n_in,
        out_specs=pl.BlockSpec(memory_space=pltpu.MemorySpace.VMEM),
    )(tok_flat, params["embedding"], params["wx"], params["wh"], params["bg"],
      params["w1"], params["b1"], params["w2"], params["b2"])
    return out[:B, :num_classes]


def init_params(key, vocab_size, embed_size, hidden_size, num_classes):
    stdv = 1.0 / math.sqrt(hidden_size)
    ks = jax.random.split(key, 8)
    u = lambda k, shape, s: jax.random.uniform(k, shape, jnp.float32, -s, s)
    return {
        # nn.Embedding default init is N(0, 1)
        "embedding": jax.random.normal(ks[0], (vocab_size, embed_size), jnp.float32),
        # fused gates along last axis, order i, f, c~, o; stored transposed (in, 4H)
        "wx": u(ks[1], (embed_size, 4 * hidden_size), stdv),
        "wh": u(ks[2], (hidden_size, 4 * hidden_size), stdv),
        "bg": u(ks[3], (1, 4 * hidden_size), stdv),
        # fc layers: PyTorch Linear default init bound = 1/sqrt(fan_in)
        "w1": u(ks[4], (hidden_size, hidden_size), 1.0 / math.sqrt(hidden_size)),
        "b1": u(ks[5], (1, hidden_size), 1.0 / math.sqrt(hidden_size)),
        "w2": u(ks[6], (hidden_size, num_classes), 1.0 / math.sqrt(hidden_size)),
        "b2": u(ks[7], (1, num_classes), 1.0 / math.sqrt(hidden_size)),
    }


def net_forward_ref(tokens, params):
    """Pure-JAX reference mirroring the PyTorch forward, for validation."""
    x = jnp.take(params["embedding"], tokens, axis=0).astype(jnp.float32)  # (B,T,E)
    B, T, _ = x.shape
    H = params["wh"].shape[0]
    wx, wh, bg = params["wx"], params["wh"], params["bg"]
    h = jnp.zeros((B, H), jnp.float32)
    c = jnp.zeros((B, H), jnp.float32)
    for t in range(T):
        x_t = x[:, t, :]
        gates = x_t @ wx + h @ wh + bg
        i_t = jax.nn.sigmoid(gates[:, 0 * H:1 * H])
        f_t = jax.nn.sigmoid(gates[:, 1 * H:2 * H])
        g_t = jnp.tanh(gates[:, 2 * H:3 * H])
        o_t = jax.nn.sigmoid(gates[:, 3 * H:4 * H])
        c = f_t * c + i_t * g_t
        h = o_t * jnp.tanh(c)
    hidden = jnp.maximum(h @ params["w1"] + params["b1"], 0.0)
    return hidden @ params["w2"] + params["b2"]


if __name__ == "__main__":
    # Small shapes consistent with the module's forward.
    B, T = 2, 8
    VOCAB, E, H, C = 50, 32, 32, 2

    key = jax.random.PRNGKey(0)
    k_tok, k_par = jax.random.split(key)
    tokens = jax.random.randint(k_tok, (B, T), 0, VOCAB, dtype=jnp.int32)
    params = init_params(k_par, VOCAB, E, H, C)

    padded = prepare_params(params)                       # hoisted, once
    fwd = jax.jit(functools.partial(net_forward, num_classes=C))

    logits = jax.block_until_ready(fwd(tokens, padded))
    ref = jax.block_until_ready(net_forward_ref(tokens, params))

    assert logits.shape == (B, C)
    assert jnp.allclose(logits, ref, atol=1e-4, rtol=1e-4)

    print("KERNEL_OK")
</pallas_src>

<mosaic_0001>
module attributes {stable_mosaic.version = 11 : i64} {
  func.func @net_kernel(%arg0: memref<64x1xi32, #tpu.memory_space<vmem>>, %arg1: memref<50x32xf32, #tpu.memory_space<vmem>>, %arg2: memref<32x128xf32, #tpu.memory_space<vmem>>, %arg3: memref<32x128xf32, #tpu.memory_space<vmem>>, %arg4: memref<1x128xf32, #tpu.memory_space<vmem>>, %arg5: memref<32x32xf32, #tpu.memory_space<vmem>>, %arg6: memref<1x32xf32, #tpu.memory_space<vmem>>, %arg7: memref<32x128xf32, #tpu.memory_space<vmem>>, %arg8: memref<1x128xf32, #tpu.memory_space<vmem>>, %arg9: memref<8x128xf32, #tpu.memory_space<vmem>>) attributes {dimension_semantics = [], scalar_prefetch = 0 : i64, scratch_operands = 0 : i64, tpu.core_type = #tpu.core_type<tc>} {
    %c0 = arith.constant 0 : index
    %c0_0 = arith.constant 0 : index
    %0 = vector.load %arg1[%c0, %c0_0] : memref<50x32xf32, #tpu.memory_space<vmem>>, vector<50x32xf32>
    %c0_1 = arith.constant 0 : index
    %c0_2 = arith.constant 0 : index
    %1 = vector.load %arg2[%c0_1, %c0_2] : memref<32x128xf32, #tpu.memory_space<vmem>>, vector<32x128xf32>
    %cst = arith.constant dense<0.000000e+00> : vector<50x128xf32>
    %2 = tpu.matmul %0, %1, %cst {dimension_numbers = #tpu.dot_dimension_numbers<[1], [0], [0], [1], [0, 0, 1, 1], [], []>} : vector<50x32xf32>, vector<32x128xf32>, vector<50x128xf32> -> vector<50x128xf32>
    %c0_3 = arith.constant 0 : index
    %c0_4 = arith.constant 0 : index
    %3 = vector.load %arg0[%c0_3, %c0_4] : memref<64x1xi32, #tpu.memory_space<vmem>>, vector<64x1xi32>
    %4 = tpu.iota {dimensions = array<i32: 1>} : vector<64x50xi32>
    %5 = vector.broadcast %3 : vector<64x1xi32> to vector<64x50xi32>
    %6 = arith.cmpi eq, %4, %5 : vector<64x50xi32>
    %7 = arith.extui %6 : vector<64x50xi1> to vector<64x50xi32>
    %8 = arith.sitofp %7 : vector<64x50xi32> to vector<64x50xf32>
    %cst_5 = arith.constant dense<0.000000e+00> : vector<64x128xf32>
    %9 = tpu.matmul %8, %2, %cst_5 {dimension_numbers = #tpu.dot_dimension_numbers<[1], [0], [0], [1], [0, 0, 1, 1], [], []>} : vector<64x50xf32>, vector<50x128xf32>, vector<64x128xf32> -> vector<64x128xf32>
    %c0_6 = arith.constant 0 : index
    %c0_7 = arith.constant 0 : index
    %10 = vector.load %arg4[%c0_6, %c0_7] : memref<1x128xf32, #tpu.memory_space<vmem>>, vector<1x128xf32>
    %11 = vector.broadcast %10 : vector<1x128xf32> to vector<64x128xf32>
    %12 = arith.addf %9, %11 : vector<64x128xf32>
    %c0_8 = arith.constant 0 : index
    %c0_9 = arith.constant 0 : index
    %13 = vector.load %arg3[%c0_8, %c0_9] : memref<32x128xf32, #tpu.memory_space<vmem>>, vector<32x128xf32>
    %cst_10 = arith.constant 0.000000e+00 : f32
    %14 = vector.broadcast %cst_10 : f32 to vector<8x32xf32>
    %cst_11 = arith.constant 0.000000e+00 : f32
    %15 = vector.broadcast %cst_11 : f32 to vector<8x32xf32>
    %16 = vector.extract_strided_slice %12 {offsets = [0, 0], sizes = [8, 128], strides = [1, 1]} : vector<64x128xf32> to vector<8x128xf32>
    %cst_12 = arith.constant dense<0.000000e+00> : vector<8x128xf32>
    %17 = tpu.matmul %14, %13, %cst_12 {dimension_numbers = #tpu.dot_dimension_numbers<[1], [0], [0], [1], [0, 0, 1, 1], [], []>} : vector<8x32xf32>, vector<32x128xf32>, vector<8x128xf32> -> vector<8x128xf32>
    %18 = arith.addf %16, %17 : vector<8x128xf32>
    %19 = arith.negf %18 : vector<8x128xf32>
    %20 = math.exp %19 : vector<8x128xf32>
    %cst_13 = arith.constant 1.000000e+00 : f32
    %21 = vector.broadcast %cst_13 : f32 to vector<8x128xf32>
    %22 = arith.addf %21, %20 : vector<8x128xf32>
    %23 = arith.divf %21, %22 : vector<8x128xf32>
    %24 = vector.extract_strided_slice %23 {offsets = [0, 0], sizes = [8, 32], strides = [1, 1]} : vector<8x128xf32> to vector<8x32xf32>
    %25 = vector.extract_strided_slice %23 {offsets = [0, 32], sizes = [8, 32], strides = [1, 1]} : vector<8x128xf32> to vector<8x32xf32>
    %26 = vector.extract_strided_slice %18 {offsets = [0, 64], sizes = [8, 32], strides = [1, 1]} : vector<8x128xf32> to vector<8x32xf32>
    %27 = math.tanh %26 : vector<8x32xf32>
    %28 = vector.extract_strided_slice %23 {offsets = [0, 96], sizes = [8, 32], strides = [1, 1]} : vector<8x128xf32> to vector<8x32xf32>
    %29 = arith.mulf %25, %15 : vector<8x32xf32>
    %30 = arith.mulf %24, %27 : vector<8x32xf32>
    %31 = arith.addf %29, %30 : vector<8x32xf32>
    %32 = math.tanh %31 : vector<8x32xf32>
    %33 = arith.mulf %28, %32 : vector<8x32xf32>
    %34 = vector.extract_strided_slice %12 {offsets = [8, 0], sizes = [8, 128], strides = [1, 1]} : vector<64x128xf32> to vector<8x128xf32>
    %cst_14 = arith.constant dense<0.000000e+00> : vector<8x128xf32>
    %35 = tpu.matmul %33, %13, %cst_14 {dimension_numbers = #tpu.dot_dimension_numbers<[1], [0], [0], [1], [0, 0, 1, 1], [], []>} : vector<8x32xf32>, vector<32x128xf32>, vector<8x128xf32> -> vector<8x128xf32>
    %36 = arith.addf %34, %35 : vector<8x128xf32>
    %37 = arith.negf %36 : vector<8x128xf32>
    %38 = math.exp %37 : vector<8x128xf32>
    %cst_15 = arith.constant 1.000000e+00 : f32
    %39 = vector.broadcast %cst_15 : f32 to vector<8x128xf32>
    %40 = arith.addf %39, %38 : vector<8x128xf32>
    %41 = arith.divf %39, %40 : vector<8x128xf32>
    %42 = vector.extract_strided_slice %41 {offsets = [0, 0], sizes = [8, 32], strides = [1, 1]} : vector<8x128xf32> to vector<8x32xf32>
    %43 = vector.extract_strided_slice %41 {offsets = [0, 32], sizes = [8, 32], strides = [1, 1]} : vector<8x128xf32> to vector<8x32xf32>
    %44 = vector.extract_strided_slice %36 {offsets = [0, 64], sizes = [8, 32], strides = [1, 1]} : vector<8x128xf32> to vector<8x32xf32>
    %45 = math.tanh %44 : vector<8x32xf32>
    %46 = vector.extract_strided_slice %41 {offsets = [0, 96], sizes = [8, 32], strides = [1, 1]} : vector<8x128xf32> to vector<8x32xf32>
    %47 = arith.mulf %43, %31 : vector<8x32xf32>
    %48 = arith.mulf %42, %45 : vector<8x32xf32>
    %49 = arith.addf %47, %48 : vector<8x32xf32>
    %50 = math.tanh %49 : vector<8x32xf32>
    %51 = arith.mulf %46, %50 : vector<8x32xf32>
    %52 = vector.extract_strided_slice %12 {offsets = [16, 0], sizes = [8, 128], strides = [1, 1]} : vector<64x128xf32> to vector<8x128xf32>
    %cst_16 = arith.constant dense<0.000000e+00> : vector<8x128xf32>
    %53 = tpu.matmul %51, %13, %cst_16 {dimension_numbers = #tpu.dot_dimension_numbers<[1], [0], [0], [1], [0, 0, 1, 1], [], []>} : vector<8x32xf32>, vector<32x128xf32>, vector<8x128xf32> -> vector<8x128xf32>
    %54 = arith.addf %52, %53 : vector<8x128xf32>
    %55 = arith.negf %54 : vector<8x128xf32>
    %56 = math.exp %55 : vector<8x128xf32>
    %cst_17 = arith.constant 1.000000e+00 : f32
    %57 = vector.broadcast %cst_17 : f32 to vector<8x128xf32>
    %58 = arith.addf %57, %56 : vector<8x128xf32>
    %59 = arith.divf %57, %58 : vector<8x128xf32>
    %60 = vector.extract_strided_slice %59 {offsets = [0, 0], sizes = [8, 32], strides = [1, 1]} : vector<8x128xf32> to vector<8x32xf32>
    %61 = vector.extract_strided_slice %59 {offsets = [0, 32], sizes = [8, 32], strides = [1, 1]} : vector<8x128xf32> to vector<8x32xf32>
    %62 = vector.extract_strided_slice %54 {offsets = [0, 64], sizes = [8, 32], strides = [1, 1]} : vector<8x128xf32> to vector<8x32xf32>
    %63 = math.tanh %62 : vector<8x32xf32>
    %64 = vector.extract_strided_slice %59 {offsets = [0, 96], sizes = [8, 32], strides = [1, 1]} : vector<8x128xf32> to vector<8x32xf32>
    %65 = arith.mulf %61, %49 : vector<8x32xf32>
    %66 = arith.mulf %60, %63 : vector<8x32xf32>
    %67 = arith.addf %65, %66 : vector<8x32xf32>
    %68 = math.tanh %67 : vector<8x32xf32>
    %69 = arith.mulf %64, %68 : vector<8x32xf32>
    %70 = vector.extract_strided_slice %12 {offsets = [24, 0], sizes = [8, 128], strides = [1, 1]} : vector<64x128xf32> to vector<8x128xf32>
    %cst_18 = arith.constant dense<0.000000e+00> : vector<8x128xf32>
    %71 = tpu.matmul %69, %13, %cst_18 {dimension_numbers = #tpu.dot_dimension_numbers<[1], [0], [0], [1], [0, 0, 1, 1], [], []>} : vector<8x32xf32>, vector<32x128xf32>, vector<8x128xf32> -> vector<8x128xf32>
    %72 = arith.addf %70, %71 : vector<8x128xf32>
    %73 = arith.negf %72 : vector<8x128xf32>
    %74 = math.exp %73 : vector<8x128xf32>
    %cst_19 = arith.constant 1.000000e+00 : f32
    %75 = vector.broadcast %cst_19 : f32 to vector<8x128xf32>
    %76 = arith.addf %75, %74 : vector<8x128xf32>
    %77 = arith.divf %75, %76 : vector<8x128xf32>
    %78 = vector.extract_strided_slice %77 {offsets = [0, 0], sizes = [8, 32], strides = [1, 1]} : vector<8x128xf32> to vector<8x32xf32>
    %79 = vector.extract_strided_slice %77 {offsets = [0, 32], sizes = [8, 32], strides = [1, 1]} : vector<8x128xf32> to vector<8x32xf32>
    %80 = vector.extract_strided_slice %72 {offsets = [0, 64], sizes = [8, 32], strides = [1, 1]} : vector<8x128xf32> to vector<8x32xf32>
    %81 = math.tanh %80 : vector<8x32xf32>
    %82 = vector.extract_strided_slice %77 {offsets = [0, 96], sizes = [8, 32], strides = [1, 1]} : vector<8x128xf32> to vector<8x32xf32>
    %83 = arith.mulf %79, %67 : vector<8x32xf32>
    %84 = arith.mulf %78, %81 : vector<8x32xf32>
    %85 = arith.addf %83, %84 : vector<8x32xf32>
    %86 = math.tanh %85 : vector<8x32xf32>
    %87 = arith.mulf %82, %86 : vector<8x32xf32>
    %88 = vector.extract_strided_slice %12 {offsets = [32, 0], sizes = [8, 128], strides = [1, 1]} : vector<64x128xf32> to vector<8x128xf32>
    %cst_20 = arith.constant dense<0.000000e+00> : vector<8x128xf32>
    %89 = tpu.matmul %87, %13, %cst_20 {dimension_numbers = #tpu.dot_dimension_numbers<[1], [0], [0], [1], [0, 0, 1, 1], [], []>} : vector<8x32xf32>, vector<32x128xf32>, vector<8x128xf32> -> vector<8x128xf32>
    %90 = arith.addf %88, %89 : vector<8x128xf32>
    %91 = arith.negf %90 : vector<8x128xf32>
    %92 = math.exp %91 : vector<8x128xf32>
    %cst_21 = arith.constant 1.000000e+00 : f32
    %93 = vector.broadcast %cst_21 : f32 to vector<8x128xf32>
    %94 = arith.addf %93, %92 : vector<8x128xf32>
    %95 = arith.divf %93, %94 : vector<8x128xf32>
    %96 = vector.extract_strided_slice %95 {offsets = [0, 0], sizes = [8, 32], strides = [1, 1]} : vector<8x128xf32> to vector<8x32xf32>
    %97 = vector.extract_strided_slice %95 {offsets = [0, 32], sizes = [8, 32], strides = [1, 1]} : vector<8x128xf32> to vector<8x32xf32>
    %98 = vector.extract_strided_slice %90 {offsets = [0, 64], sizes = [8, 32], strides = [1, 1]} : vector<8x128xf32> to vector<8x32xf32>
    %99 = math.tanh %98 : vector<8x32xf32>
    %100 = vector.extract_strided_slice %95 {offsets = [0, 96], sizes = [8, 32], strides = [1, 1]} : vector<8x128xf32> to vector<8x32xf32>
    %101 = arith.mulf %97, %85 : vector<8x32xf32>
    %102 = arith.mulf %96, %99 : vector<8x32xf32>
    %103 = arith.addf %101, %102 : vector<8x32xf32>
    %104 = math.tanh %103 : vector<8x32xf32>
    %105 = arith.mulf %100, %104 : vector<8x32xf32>
    %106 = vector.extract_strided_slice %12 {offsets = [40, 0], sizes = [8, 128], strides = [1, 1]} : vector<64x128xf32> to vector<8x128xf32>
    %cst_22 = arith.constant dense<0.000000e+00> : vector<8x128xf32>
    %107 = tpu.matmul %105, %13, %cst_22 {dimension_numbers = #tpu.dot_dimension_numbers<[1], [0], [0], [1], [0, 0, 1, 1], [], []>} : vector<8x32xf32>, vector<32x128xf32>, vector<8x128xf32> -> vector<8x128xf32>
    %108 = arith.addf %106, %107 : vector<8x128xf32>
    %109 = arith.negf %108 : vector<8x128xf32>
    %110 = math.exp %109 : vector<8x128xf32>
    %cst_23 = arith.constant 1.000000e+00 : f32
    %111 = vector.broadcast %cst_23 : f32 to vector<8x128xf32>
    %112 = arith.addf %111, %110 : vector<8x128xf32>
    %113 = arith.divf %111, %112 : vector<8x128xf32>
    %114 = vector.extract_strided_slice %113 {offsets = [0, 0], sizes = [8, 32], strides = [1, 1]} : vector<8x128xf32> to vector<8x32xf32>
    %115 = vector.extract_strided_slice %113 {offsets = [0, 32], sizes = [8, 32], strides = [1, 1]} : vector<8x128xf32> to vector<8x32xf32>
    %116 = vector.extract_strided_slice %108 {offsets = [0, 64], sizes = [8, 32], strides = [1, 1]} : vector<8x128xf32> to vector<8x32xf32>
    %117 = math.tanh %116 : vector<8x32xf32>
    %118 = vector.extract_strided_slice %113 {offsets = [0, 96], sizes = [8, 32], strides = [1, 1]} : vector<8x128xf32> to vector<8x32xf32>
    %119 = arith.mulf %115, %103 : vector<8x32xf32>
    %120 = arith.mulf %114, %117 : vector<8x32xf32>
    %121 = arith.addf %119, %120 : vector<8x32xf32>
    %122 = math.tanh %121 : vector<8x32xf32>
    %123 = arith.mulf %118, %122 : vector<8x32xf32>
    %124 = vector.extract_strided_slice %12 {offsets = [48, 0], sizes = [8, 128], strides = [1, 1]} : vector<64x128xf32> to vector<8x128xf32>
    %cst_24 = arith.constant dense<0.000000e+00> : vector<8x128xf32>
    %125 = tpu.matmul %123, %13, %cst_24 {dimension_numbers = #tpu.dot_dimension_numbers<[1], [0], [0], [1], [0, 0, 1, 1], [], []>} : vector<8x32xf32>, vector<32x128xf32>, vector<8x128xf32> -> vector<8x128xf32>
    %126 = arith.addf %124, %125 : vector<8x128xf32>
    %127 = arith.negf %126 : vector<8x128xf32>
    %128 = math.exp %127 : vector<8x128xf32>
    %cst_25 = arith.constant 1.000000e+00 : f32
    %129 = vector.broadcast %cst_25 : f32 to vector<8x128xf32>
    %130 = arith.addf %129, %128 : vector<8x128xf32>
    %131 = arith.divf %129, %130 : vector<8x128xf32>
    %132 = vector.extract_strided_slice %131 {offsets = [0, 0], sizes = [8, 32], strides = [1, 1]} : vector<8x128xf32> to vector<8x32xf32>
    %133 = vector.extract_strided_slice %131 {offsets = [0, 32], sizes = [8, 32], strides = [1, 1]} : vector<8x128xf32> to vector<8x32xf32>
    %134 = vector.extract_strided_slice %126 {offsets = [0, 64], sizes = [8, 32], strides = [1, 1]} : vector<8x128xf32> to vector<8x32xf32>
    %135 = math.tanh %134 : vector<8x32xf32>
    %136 = vector.extract_strided_slice %131 {offsets = [0, 96], sizes = [8, 32], strides = [1, 1]} : vector<8x128xf32> to vector<8x32xf32>
    %137 = arith.mulf %133, %121 : vector<8x32xf32>
    %138 = arith.mulf %132, %135 : vector<8x32xf32>
    %139 = arith.addf %137, %138 : vector<8x32xf32>
    %140 = math.tanh %139 : vector<8x32xf32>
    %141 = arith.mulf %136, %140 : vector<8x32xf32>
    %142 = vector.extract_strided_slice %12 {offsets = [56, 0], sizes = [8, 128], strides = [1, 1]} : vector<64x128xf32> to vector<8x128xf32>
    %cst_26 = arith.constant dense<0.000000e+00> : vector<8x128xf32>
    %143 = tpu.matmul %141, %13, %cst_26 {dimension_numbers = #tpu.dot_dimension_numbers<[1], [0], [0], [1], [0, 0, 1, 1], [], []>} : vector<8x32xf32>, vector<32x128xf32>, vector<8x128xf32> -> vector<8x128xf32>
    %144 = arith.addf %142, %143 : vector<8x128xf32>
    %145 = arith.negf %144 : vector<8x128xf32>
    %146 = math.exp %145 : vector<8x128xf32>
    %cst_27 = arith.constant 1.000000e+00 : f32
    %147 = vector.broadcast %cst_27 : f32 to vector<8x128xf32>
    %148 = arith.addf %147, %146 : vector<8x128xf32>
    %149 = arith.divf %147, %148 : vector<8x128xf32>
    %150 = vector.extract_strided_slice %149 {offsets = [0, 0], sizes = [8, 32], strides = [1, 1]} : vector<8x128xf32> to vector<8x32xf32>
    %151 = vector.extract_strided_slice %149 {offsets = [0, 32], sizes = [8, 32], strides = [1, 1]} : vector<8x128xf32> to vector<8x32xf32>
    %152 = vector.extract_strided_slice %144 {offsets = [0, 64], sizes = [8, 32], strides = [1, 1]} : vector<8x128xf32> to vector<8x32xf32>
    %153 = math.tanh %152 : vector<8x32xf32>
    %154 = vector.extract_strided_slice %149 {offsets = [0, 96], sizes = [8, 32], strides = [1, 1]} : vector<8x128xf32> to vector<8x32xf32>
    %155 = arith.mulf %151, %139 : vector<8x32xf32>
    %156 = arith.mulf %150, %153 : vector<8x32xf32>
    %157 = arith.addf %155, %156 : vector<8x32xf32>
    %158 = math.tanh %157 : vector<8x32xf32>
    %159 = arith.mulf %154, %158 : vector<8x32xf32>
    %c0_28 = arith.constant 0 : index
    %c0_29 = arith.constant 0 : index
    %160 = vector.load %arg5[%c0_28, %c0_29] : memref<32x32xf32, #tpu.memory_space<vmem>>, vector<32x32xf32>
    %cst_30 = arith.constant dense<0.000000e+00> : vector<8x32xf32>
    %161 = tpu.matmul %159, %160, %cst_30 {dimension_numbers = #tpu.dot_dimension_numbers<[1], [0], [0], [1], [0, 0, 1, 1], [], []>} : vector<8x32xf32>, vector<32x32xf32>, vector<8x32xf32> -> vector<8x32xf32>
    %c0_31 = arith.constant 0 : index
    %c0_32 = arith.constant 0 : index
    %162 = vector.load %arg6[%c0_31, %c0_32] : memref<1x32xf32, #tpu.memory_space<vmem>>, vector<1x32xf32>
    %163 = vector.broadcast %162 : vector<1x32xf32> to vector<8x32xf32>
    %164 = arith.addf %161, %163 : vector<8x32xf32>
    %cst_33 = arith.constant 0.000000e+00 : f32
    %165 = vector.broadcast %cst_33 : f32 to vector<8x32xf32>
    %166 = arith.maximumf %164, %165 : vector<8x32xf32>
    %c0_34 = arith.constant 0 : index
    %c0_35 = arith.constant 0 : index
    %167 = vector.load %arg7[%c0_34, %c0_35] : memref<32x128xf32, #tpu.memory_space<vmem>>, vector<32x128xf32>
    %cst_36 = arith.constant dense<0.000000e+00> : vector<8x128xf32>
    %168 = tpu.matmul %166, %167, %cst_36 {dimension_numbers = #tpu.dot_dimension_numbers<[1], [0], [0], [1], [0, 0, 1, 1], [], []>} : vector<8x32xf32>, vector<32x128xf32>, vector<8x128xf32> -> vector<8x128xf32>
    %c0_37 = arith.constant 0 : index
    %c0_38 = arith.constant 0 : index
    %169 = vector.load %arg8[%c0_37, %c0_38] : memref<1x128xf32, #tpu.memory_space<vmem>>, vector<1x128xf32>
    %170 = vector.broadcast %169 : vector<1x128xf32> to vector<8x128xf32>
    %171 = arith.addf %168, %170 : vector<8x128xf32>
    %c0_39 = arith.constant 0 : index
    %c0_40 = arith.constant 0 : index
    %172 = vector.load %arg9[%c0_39, %c0_40] : memref<8x128xf32, #tpu.memory_space<vmem>>, vector<8x128xf32>
    tpu.vector_store %arg9[%c0_39, %c0_40], %171 {strides = array<i32>} : memref<8x128xf32, #tpu.memory_space<vmem>>, vector<8x128xf32>,
    return
  }
}

</mosaic_0001>

<bundles_post_ra>
// kernel: net_forward.1
= control target key start
LH: loop header
LB: loop body
LE: loop exit
PB: predicated region body
PF: predicated region fallthrough
CT: control target
= control target key end

     0   :  { %v1777_v0 = vmov 0.0|0.0   ;;  %vm1778_vm0 = vmmov 0   ;;  %v1779_v4 = vmov 0.0   ;;  %v1780_v7 = vmov 0   ;;  %s1782_s10 = smov 32   ;;  %s2107_s2 = inlined_call_operand.vmem [shape: f32[32,128], index: 2, kind: input, shape index: {}]   ;;  %s2108_s0 = inlined_call_operand.vmem [shape: s32[64,1], index: 0, kind: input, shape index: {}]   ;;  %s2109_s1 = inlined_call_operand.vmem [shape: f32[50,32], index: 1, kind: input, shape index: {}]   ;;  %s2110_s3 = inlined_call_operand.vmem [shape: f32[32,128], index: 3, kind: input, shape index: {}]   ;;  %s2111_s4 = inlined_call_operand.vmem [shape: f32[1,128], index: 4, kind: input, shape index: {}]   ;;  %s2112_s5 = inlined_call_operand.vmem [shape: f32[32,32], index: 5, kind: input, shape index: {}]   ;;  %s2113_s7 = inlined_call_operand.vmem [shape: f32[32,128], index: 7, kind: input, shape index: {}]   ;;  %s2114_s6 = inlined_call_operand.vmem [shape: f32[1,32], index: 6, kind: input, shape index: {}]   ;;  %s2115_s8 = inlined_call_operand.vmem [shape: f32[1,128], index: 8, kind: input, shape index: {}]   ;;  %s2116_s9 = inlined_call_operand.vmem [shape: f32[8,128], index: 9, kind: output, shape index: {}]  }
   0x1   :  { %1627 = vmatprep.subr.bf16.mxu0 %v1777_v0  ;;  %v39_v1 = vld [vmem:[%s2107_s2] sm:$0xff]  ;;  %v40_v2 = vld [vmem:[%s2107_s2 + $0x8] sm:$0xff]  ;;  %v41_v3 = vld [vmem:[%s2107_s2 + $0x10] sm:$0xff]  ;;  %1470 = vmatprep.mubr.msk.f32.mxu0 %vm1778_vm0, %v1779_v4  ;;  %vm43_vm1 = vcmask 261120   ;;  %v173_v24 = vlaneseq  ;;  %vm230_vm2 = vcmask 408576   ;;  %vm255_vm4 = vcmask 1041408  }
   0x2   :  { %v1628_v5 = vpack.c.bf16 %v40_v2, %v39_v1  ;;  %v42_v6 = vld [vmem:[%s2107_s2 + $0x18] sm:$0xff]  ;;  %1711 = vset.pattern.permute.xlu0 %v1780_v7  ;;  %1712 = vset.pattern.permute.xlu1 %v1780_v7  ;;  %v165_v9 = vld [vmem:[%s2108_s0] sm:$0xff]  ;;  %v167_v10 = vld [vmem:[%s2108_s0 + $0x10] sm:$0xff] }
   0x3   :  { %v1631_v8 = vpack.c.bf16 %v42_v6, %v41_v3  ;;  %176 = vperm.xlu0 %1711, %v165_v9   ;;  %182 = vperm.xlu1 %1712, %v167_v10   ;;  %v166_v11 = vld [vmem:[%s2108_s0 + $0x8] sm:$0xff]  ;;  %v168_v12 = vld [vmem:[%s2108_s0 + $0x18] sm:$0xff]  ;;  %v32_v13 = vld [vmem:[%s2109_s1] sm:$0xff]  ;;  %v1925_v28 = vand.u32 127, %v173_v24 }
   0x4   :  { %1629 = vmatpush3.bf16.msra.mxu0 %v1628_v5  ;;  %v169_v14 = vld [vmem:[%s2108_s0 + $0x20] sm:$0xff]  ;;  %v170_v15 = vld [vmem:[%s2108_s0 + $0x28] sm:$0xff]  ;;  %v171_v17 = vld [vmem:[%s2108_s0 + $0x30] sm:$0xff] }
   0x5   :  { %1630 = vmatprep.subr.bf16.mxu0 %v1777_v0  ;;  %v33_v16 = vld [vmem:[%s2109_s1 + $0x8] sm:$0xff]  ;;  %v172_v18 = vld [vmem:[%s2108_s0 + $0x38] sm:$0xff]  ;;  %v34_v19 = vld [vmem:[%s2109_s1 + $0x10] sm:$0xff] }
   0x6   :  { %v35_v20 = vld [vmem:[%s2109_s1 + $0x18] sm:$0xff]  ;;  %v36_v21 = vld [vmem:[%s2109_s1 + $0x20] sm:$0xff]  ;;  %v37_v22 = vld [vmem:[%s2109_s1 + $0x28] sm:$0xff] }
   0x7   :  { %179 = vperm.xlu0 %1711, %v166_v11   ;;  %185 = vperm.xlu1 %1712, %v168_v12   ;;  %v38_v23 = vld [vmem:[%s2109_s1 + $0x30] sm:$0x3]  ;;  %v364_v25 = vld [vmem:[%s2110_s3] sm:$0xff]  ;;  %v365_v26 = vld [vmem:[%s2110_s3 + $0x8] sm:$0xff] }
   0x8   :  { %1632 = vmatpush3.bf16.msra.mxu0 %v1631_v8  ;;  %v1922_v27 = vpack.c.bf16 %v365_v26, %v364_v25  ;;  %v366_v30 = vld [vmem:[%s2110_s3 + $0x10] sm:$0xff]  ;;  %v367_v31 = vld [vmem:[%s2110_s3 + $0x18] sm:$0xff]  ;;  %v1357_v2 = vld [vmem:[%s2111_s4] ss:$0 sm:$0xff]  ;;  %s1781_s4 = smov 64  }
   0x9   :  { %1651 = vmatprep.subr.bf16.mxu0 %v1777_v0  ;;  %v1935_v32 = vpack.c.bf16 %v367_v31, %v366_v30 }
   0xb   :  { %1471 = vmatmul.mubr.msk.f32.vlgmr.msra.gmra.mrb[0].mxu0 %vm43_vm1, %v32_v13  ;;  %188 = vperm.xlu0 %1711, %v169_v14  }
   0xc   :  { %1473 = vmatprep.mubr.msk.f32.mxu0 %vm1778_vm0, %v1779_v4  ;;  %191 = vperm.xlu1 %1712, %v170_v15  }
   0xd   :  { %1653 = vmatpush3.bf16.msra.mxu0 %v1922_v27 }
   0xe   :  { %1654 = vmatprep.subr.bf16.mxu0 %v1777_v0 }
   0xf   :  { %1474 = vmatmul.mubr.msk.f32.gmra.mrb[2].mxu0 %vm43_vm1, %v33_v16  ;;  %194 = vperm.xlu0 %1711, %v171_v17  }
  0x10   :  { %1476 = vmatprep.mubr.msk.f32.mxu0 %vm1778_vm0, %v1779_v4  ;;  %197 = vperm.xlu1 %1712, %v172_v18  }
  0x11   :  { %1656 = vmatpush3.bf16.msra.mxu0 %v1935_v32 }
  0x12   :  { %1663 = vmatprep.subr.bf16.mxu0 %v1777_v0 }
  0x13   :  { %1477 = vmatmul.mubr.msk.f32.gmra.mrb[4].mxu0 %vm43_vm1, %v34_v19 }
  0x14   :  { %1479 = vmatprep.mubr.msk.f32.mxu0 %vm1778_vm0, %v1779_v4 }
  0x17   :  { %1480 = vmatmul.mubr.msk.f32.gmra.mrb[6].mxu0 %vm43_vm1, %v35_v20 }
  0x18   :  { %1482 = vmatprep.mubr.msk.f32.mxu0 %vm1778_vm0, %v1779_v4 }
  0x1b   :  { %1483 = vmatmul.mubr.msk.f32.gmra.mrb[8].mxu0 %vm43_vm1, %v36_v21 }
  0x1c   :  { %1485 = vmatprep.mubr.msk.f32.mxu0 %vm1778_vm0, %v1779_v4 }
  0x1f   :  { %1486 = vmatmul.mubr.msk.f32.gmra.mrb[10].mxu0 %vm43_vm1, %v37_v22 }
  0x20   :  { %1488 = vmatprep.mubr.msk.f32.mxu0 %vm1778_vm0, %v1779_v4 }
  0x23   :  { %1489 = vmatmul.mubr.msk.f32.gmra.mrb[12].mxu0 %vm43_vm1, %v38_v23 }
  0x24   :  { %1536 = vmatprep.mubr.msk.f32.mxu0 %vm1778_vm0, %v1779_v4 }
  0x82   :  { %v177_v29 = vpop.permute.xlu0 %176  ;;  %v183_v44 = vpop.permute.xlu1 %182 }
  0x83   :  { %vm199_vm3 = vcmp.eq.s32.totalorder %v1925_v28, %v177_v29  ;;  %vm201_vm5 = vcmp.eq.s32.totalorder %v1925_v28, %v183_v44 }
  0x84   :  { %v1349_v33 = vsel %vm199_vm3, 1.0, %v1779_v4  ;;  %v1351_v55 = vsel %vm201_vm5, 1.0, %v1779_v4 }
  0x85   :  { %1505 = vmatprep.mubr.msk.f32.mxu1 %vm230_vm2, %v1349_v33 }
  0x86   :  { %v180_v47 = vpop.permute.xlu0 %179  ;;  %v186_v51 = vpop.permute.xlu1 %185 }
  0x87   :  { %vm200_vm6 = vcmp.eq.s32.totalorder %v1925_v28, %v180_v47  ;;  %vm202_vm7 = vcmp.eq.s32.totalorder %v1925_v28, %v186_v51 }
  0x88   :  { %v1350_v56 = vsel %vm200_vm6, 1.0, %v1779_v4  ;;  %v1352_v59 = vsel %vm202_vm7, 1.0, %v1779_v4 }
  0x8a   :  { %v189_v53 = vpop.permute.xlu0 %188 }
  0x8b   :  { %v192_v57 = vpop.permute.xlu1 %191  ;;  %vm203_vm8 = vcmp.eq.s32.totalorder %v1925_v28, %v189_v53 }
  0x8c   :  { %v1353_v60 = vsel %vm203_vm8, 1.0, %v1779_v4  ;;  %vm204_vm9 = vcmp.eq.s32.totalorder %v1925_v28, %v192_v57 }
  0x8d   :  { %v1354_v62 = vsel %vm204_vm9, 1.0, %v1779_v4 }
  0x8e   :  { %v195_v58 = vpop.permute.xlu0 %194 }
  0x8f   :  { %vm205_vm10 = vcmp.eq.s32.totalorder %v1925_v28, %v195_v58  ;;  %v198_v61 = vpop.permute.xlu1 %197 }
  0x90   :  { %v1355_v63 = vsel %vm205_vm10, 1.0, %v1779_v4  ;;  %vm206_vm11 = vcmp.eq.s32.totalorder %v1925_v28, %v198_v61 }
  0x91   :  { %v1356_v1 = vsel %vm206_vm11, 1.0, %v1779_v4 }
  0xde   :  { %v131_v34 = vpop.f32.mrb[0].mxu0 }
  0xdf   :  { %v1472_v35 = vpop.f32.mrb[1].mxu0 }
  0xe2   :  { %v136_v36 = vpop.f32.mrb[2].mxu0 }
  0xe3   :  { %v1633_v37 = vpack.c.bf16 %v136_v36, %v131_v34  ;;  %v1475_v38 = vpop.f32.mrb[3].mxu0 }
  0xe5   :  { %1634 = vmatprep.subr.bf16.mxu1 %v1633_v37 }
  0xe6   :  { %v141_v39 = vpop.f32.mrb[4].mxu0  ;;  %1636 = vmatpush3.bf16.msra.mxu1 %v1633_v37 }
  0xe7   :  { %v1478_v40 = vpop.f32.mrb[5].mxu0 }
  0xea   :  { %v146_v41 = vpop.f32.mrb[6].mxu0 }
  0xeb   :  { %v1637_v42 = vpack.c.bf16 %v146_v41, %v141_v39  ;;  %v1481_v43 = vpop.f32.mrb[7].mxu0 }
  0xed   :  { %1638 = vmatprep.subr.bf16.mxu1 %v1637_v42 }
  0xee   :  { %v151_v45 = vpop.f32.mrb[8].mxu0  ;;  %1640 = vmatpush3.bf16.msra.mxu1 %v1637_v42 }
  0xef   :  { %v1484_v46 = vpop.f32.mrb[9].mxu0 }
  0xf2   :  { %v156_v48 = vpop.f32.mrb[10].mxu0 }
  0xf3   :  { %v1641_v49 = vpack.c.bf16 %v156_v48, %v151_v45  ;;  %v1487_v50 = vpop.f32.mrb[11].mxu0 }
  0xf5   :  { %1642 = vmatprep.subr.bf16.mxu1 %v1641_v49 }
  0xf6   :  { %1644 = vmatpush3.bf16.msra.mxu1 %v1641_v49  ;;  %v161_v52 = vpop.f32.mrb[12].mxu0 }
  0xf7   :  { %v1490_v54 = vpop.f32.mrb[13].mxu0  ;;  %1503 = vmatprep.subr.msk.mxu1 %vm255_vm4, %v161_v52 }
  0xfa   :  { %1504 = vmatpush3.msk.msra.mxu1 %vm255_vm4, %v161_v52 }
  0xfb   :  { %1506 = vmatmul.mubr.msk.f32.vlgmr.msra.gmra.mrb[0].mxu1 %vm230_vm2, %v1350_v56  ;;  %1645 = vmatprep.subr.bf16.mxu1 %v1777_v0 }
  0xfc   :  { %1508 = vmatprep.mubr.msk.f32.mxu1 %vm230_vm2, %v1351_v55  ;;  %1647 = vmatpush3.bf16.msra.mxu1 %v1922_v27 }
  0xfd   :  { %1648 = vmatprep.subr.bf16.mxu1 %v1777_v0 }
  0xff   :  { %1509 = vmatmul.mubr.msk.f32.gmra.mrb[2].mxu1 %vm230_vm2, %v1352_v59 }
 0x100   :  { %1511 = vmatprep.mubr.msk.f32.mxu1 %vm230_vm2, %v1353_v60  ;;  %1650 = vmatpush3.bf16.msra.mxu1 %v1935_v32 }
 0x101   :  { %1657 = vmatprep.subr.bf16.mxu1 %v1777_v0 }
 0x103   :  { %1512 = vmatmul.mubr.msk.f32.gmra.mrb[4].mxu1 %vm230_vm2, %v1354_v62 }
 0x104   :  { %1514 = vmatprep.mubr.msk.f32.mxu1 %vm230_vm2, %v1355_v63 }
 0x107   :  { %1515 = vmatmul.mubr.msk.f32.gmra.mrb[6].mxu1 %vm230_vm2, %v1356_v1 }
 0x108   :  { %1525 = vmatprep.mubr.msk.f32.mxu1 %vm1778_vm0, %v1779_v4 }
 0x10b   :  { %1526 = vmatmul.mubr.f32.vlgmr.msra.gmra.mrb[8].mxu1 %v1779_v4 }
 0x10c   :  { %1659 = vmatpush3.bf16.msra.mxu1 %v1922_v27  ;;  %1547 = vmatprep.mubr.msk.f32.mxu1 %vm1778_vm0, %v1779_v4 }
 0x10d   :  { %1660 = vmatprep.subr.bf16.mxu1 %v1777_v0 }
 0x110   :  { %1662 = vmatpush3.bf16.msra.mxu1 %v1935_v32 }
 0x111   :  { %1669 = vmatprep.subr.bf16.mxu1 %v1777_v0 }
 0x1ce   :  { %v1507_v3 = vpop.f32.mrb[0].mxu1 }
 0x1cf   :  { %v331_v5 = vadd.f32 %v1507_v3, %v1357_v2  ;;  %v325_v6 = vpop.f32.mrb[1].mxu1 }
 0x1d0   :  { %v326_v19 = vadd.f32 %v1357_v2, %v325_v6 }
 0x1d2   :  { %v1510_v7 = vpop.f32.mrb[2].mxu1 }
 0x1d3   :  { %v1979_v8 = vadd.f32 %v1510_v7, %v1357_v2  ;;  %v335_v9 = vpop.f32.mrb[3].mxu1 }
 0x1d4   :  { %v1981_v10 = vadd.f32 %v1357_v2, %v335_v9 }
 0x1d6   :  { %v1513_v11 = vpop.f32.mrb[4].mxu1 }
 0x1d7   :  { %v1983_v12 = vadd.f32 %v1513_v11, %v1357_v2  ;;  %v345_v13 = vpop.f32.mrb[5].mxu1 }
 0x1d8   :  { %v1985_v14 = vadd.f32 %v1357_v2, %v345_v13 }
 0x1da   :  { %v1516_v15 = vpop.f32.mrb[6].mxu1 }
 0x1db   :  { %v1987_v16 = vadd.f32 %v1516_v15, %v1357_v2  ;;  %v355_v17 = vpop.f32.mrb[7].mxu1 }
 0x1dc   :  { %v1989_v18 = vadd.f32 %v1357_v2, %v355_v17 }
 0x1de   :  { %v437_v20 = vpop.f32.mrb[8].mxu1 }
 0x1df   :  { %v441_v21 = vadd.f32 %v437_v20, %v326_v19  ;;  %v1527_v22 = vpop.f32.mrb[9].mxu1 }
 0x1e1   :  { %1713 = vtanh.f32 %v441_v21  ;;  %v1367_v24 = vmul.f32 -1.442695, %v441_v21 }
 0x1e3   :  { %1715 = vpow2.f32 %v1367_v24 }
 0x1eb   :  { %v1714_v23 = vpop.eup %1713 }
 0x1ec   :  { %451 = vrot.lane.b32.xlu0 %v1714_v23, %s1781_s4 }
 0x1ed   :  { %v1716_v25 = vpop.eup %1715 }
 0x1ee   :  { %v445_v26 = vadd.f32 1.0, %v1716_v25 }
 0x1f0   :  { %1717 = vrcp.f32 %v445_v26 }
 0x1fa   :  { %v1718_v28 = vpop.eup %1717 }
 0x1fb   :  { %v449_v31 = vmul.f32 0.0, %v1718_v28 }
 0x25e   :  { %v452_v29 = vpop.permute.xlu0 %451 }
 0x25f   :  { %v454_v30 = vmul.f32 %v1718_v28, %v452_v29 }
 0x261   :  { %456 = vrot.lane.b32.xlu1 %v454_v30, %s1782_s10 }
 0x2d3   :  { %v457_v33 = vpop.permute.xlu1 %456 }
 0x2d4   :  { %v459_v34 = vadd.f32 %v457_v33, %v449_v31 }
 0x2d6   :  { %1719 = vtanh.f32 %v459_v34 }
 0x2e0   :  { %v1720_v35 = vpop.eup %1719 }
 0x2e1   :  { %462 = vrot.lane.b32.xlu0 %v1720_v35, %s1781_s4 }
 0x353   :  { %v463_v36 = vpop.permute.xlu0 %462 }
 0x354   :  { %v465_v37 = vmul.f32 %v1718_v28, %v463_v36 }
 0x356   :  { %467 = vrot.lane.b32.xlu1 %v465_v37, %s1782_s10 }
 0x3c8   :  { %v468_v38 = vpop.permute.xlu1 %467 }
 0x3c9   :  { %1537 = vmatmul.mubr.msk.f32.vlgmr.msra.gmra.mrb[14].mxu0 %vm43_vm1, %v468_v38 }
 0x3ca   :  { %1665 = vmatpush3.bf16.msra.mxu0 %v1922_v27  ;;  %1558 = vmatprep.mubr.msk.f32.mxu0 %vm1778_vm0, %v1779_v4 }
 0x3cb   :  { %1666 = vmatprep.subr.bf16.mxu0 %v1777_v0 }
 0x3ce   :  { %1668 = vmatpush3.bf16.msra.mxu0 %v1935_v32 }
 0x3cf   :  { %1675 = vmatprep.subr.bf16.mxu0 %v1777_v0 }
 0x49c   :  { %v537_v39 = vpop.f32.mrb[14].mxu0 }
 0x49d   :  { %v541_v40 = vadd.f32 %v537_v39, %v331_v5  ;;  %v1538_v41 = vpop.f32.mrb[15].mxu0 }
 0x49f   :  { %1721 = vtanh.f32 %v541_v40  ;;  %v1369_v43 = vmul.f32 -1.442695, %v541_v40 }
 0x4a1   :  { %1723 = vpow2.f32 %v1369_v43 }
 0x4a9   :  { %v1722_v42 = vpop.eup %1721 }
 0x4aa   :  { %551 = vrot.lane.b32.xlu0 %v1722_v42, %s1781_s4 }
 0x4ab   :  { %v1724_v44 = vpop.eup %1723 }
 0x4ac   :  { %v545_v45 = vadd.f32 1.0, %v1724_v44 }
 0x4ae   :  { %1725 = vrcp.f32 %v545_v45 }
 0x4b8   :  { %v1726_v46 = vpop.eup %1725 }
 0x4b9   :  { %v549_v49 = vmul.f32 %v1726_v46, %v459_v34 }
 0x51c   :  { %v552_v47 = vpop.permute.xlu0 %551 }
 0x51d   :  { %v554_v48 = vmul.f32 %v1726_v46, %v552_v47 }
 0x51f   :  { %556 = vrot.lane.b32.xlu1 %v554_v48, %s1782_s10 }
 0x591   :  { %v557_v50 = vpop.permute.xlu1 %556 }
 0x592   :  { %v559_v51 = vadd.f32 %v557_v50, %v549_v49 }
 0x594   :  { %1727 = vtanh.f32 %v559_v51 }
 0x59e   :  { %v1728_v52 = vpop.eup %1727 }
 0x59f   :  { %562 = vrot.lane.b32.xlu0 %v1728_v52, %s1781_s4 }
 0x611   :  { %v563_v53 = vpop.permute.xlu0 %562 }
 0x612   :  { %v565_v54 = vmul.f32 %v1726_v46, %v563_v53 }
 0x614   :  { %567 = vrot.lane.b32.xlu1 %v565_v54, %s1782_s10 }
 0x686   :  { %v568_v55 = vpop.permute.xlu1 %567 }
 0x687   :  { %1548 = vmatmul.mubr.msk.f32.vlgmr.msra.gmra.mrb[10].mxu1 %vm43_vm1, %v568_v55 }
 0x688   :  { %1671 = vmatpush3.bf16.msra.mxu1 %v1922_v27  ;;  %1569 = vmatprep.mubr.msk.f32.mxu1 %vm1778_vm0, %v1779_v4 }
 0x689   :  { %1672 = vmatprep.subr.bf16.mxu1 %v1777_v0 }
 0x68c   :  { %1674 = vmatpush3.bf16.msra.mxu1 %v1935_v32 }
 0x68d   :  { %1681 = vmatprep.subr.bf16.mxu1 %v1777_v0 }
 0x75a   :  { %v637_v56 = vpop.f32.mrb[10].mxu1 }
 0x75b   :  { %v641_v57 = vadd.f32 %v637_v56, %v1981_v10  ;;  %v1549_v58 = vpop.f32.mrb[11].mxu1 }
 0x75d   :  { %1729 = vtanh.f32 %v641_v57  ;;  %v1371_v60 = vmul.f32 -1.442695, %v641_v57 }
 0x75f   :  { %1731 = vpow2.f32 %v1371_v60 }
 0x767   :  { %v1730_v59 = vpop.eup %1729 }
 0x768   :  { %651 = vrot.lane.b32.xlu0 %v1730_v59, %s1781_s4 }
 0x769   :  { %v1732_v61 = vpop.eup %1731 }
 0x76a   :  { %v645_v62 = vadd.f32 1.0, %v1732_v61 }
 0x76c   :  { %1733 = vrcp.f32 %v645_v62 }
 0x776   :  { %v1734_v63 = vpop.eup %1733 }
 0x777   :  { %v649_v3 = vmul.f32 %v1734_v63, %v559_v51 }
 0x7da   :  { %v652_v1 = vpop.permute.xlu0 %651 }
 0x7db   :  { %v654_v2 = vmul.f32 %v1734_v63, %v652_v1 }
 0x7dd   :  { %656 = vrot.lane.b32.xlu1 %v654_v2, %s1782_s10 }
 0x84f   :  { %v657_v5 = vpop.permute.xlu1 %656 }
 0x850   :  { %v659_v6 = vadd.f32 %v657_v5, %v649_v3 }
 0x852   :  { %1735 = vtanh.f32 %v659_v6 }
 0x85c   :  { %v1736_v7 = vpop.eup %1735 }
 0x85d   :  { %662 = vrot.lane.b32.xlu0 %v1736_v7, %s1781_s4 }
 0x8cf   :  { %v663_v9 = vpop.permute.xlu0 %662 }
 0x8d0   :  { %v665_v10 = vmul.f32 %v1734_v63, %v663_v9 }
 0x8d2   :  { %667 = vrot.lane.b32.xlu1 %v665_v10, %s1782_s10 }
 0x944   :  { %v668_v11 = vpop.permute.xlu1 %667 }
 0x945   :  { %1559 = vmatmul.mubr.msk.f32.vlgmr.msra.gmra.mrb[16].mxu0 %vm43_vm1, %v668_v11 }
 0x946   :  { %1677 = vmatpush3.bf16.msra.mxu0 %v1922_v27  ;;  %1580 = vmatprep.mubr.msk.f32.mxu0 %vm1778_vm0, %v1779_v4 }
 0x947   :  { %1678 = vmatprep.subr.bf16.mxu0 %v1777_v0 }
 0x94a   :  { %1680 = vmatpush3.bf16.msra.mxu0 %v1935_v32 }
 0x94b   :  { %1687 = vmatprep.subr.bf16.mxu0 %v1777_v0 }
 0xa18   :  { %v737_v13 = vpop.f32.mrb[16].mxu0 }
 0xa19   :  { %v741_v15 = vadd.f32 %v737_v13, %v1979_v8  ;;  %v1560_v17 = vpop.f32.mrb[17].mxu0 }
 0xa1b   :  { %1737 = vtanh.f32 %v741_v15  ;;  %v1373_v20 = vmul.f32 -1.442695, %v741_v15 }
 0xa1d   :  { %1739 = vpow2.f32 %v1373_v20 }
 0xa25   :  { %v1738_v19 = vpop.eup %1737 }
 0xa26   :  { %751 = vrot.lane.b32.xlu0 %v1738_v19, %s1781_s4 }
 0xa27   :  { %v1740_v21 = vpop.eup %1739 }
 0xa28   :  { %v745_v22 = vadd.f32 1.0, %v1740_v21 }
 0xa2a   :  { %1741 = vrcp.f32 %v745_v22 }
 0xa34   :  { %v1742_v23 = vpop.eup %1741 }
 0xa35   :  { %v749_v26 = vmul.f32 %v1742_v23, %v659_v6 }
 0xa98   :  { %v752_v24 = vpop.permute.xlu0 %751 }
 0xa99   :  { %v754_v25 = vmul.f32 %v1742_v23, %v752_v24 }
 0xa9b   :  { %756 = vrot.lane.b32.xlu1 %v754_v25, %s1782_s10 }
 0xb0d   :  { %v757_v28 = vpop.permute.xlu1 %756 }
 0xb0e   :  { %v759_v29 = vadd.f32 %v757_v28, %v749_v26 }
 0xb10   :  { %1743 = vtanh.f32 %v759_v29 }
 0xb1a   :  { %v1744_v8 = vpop.eup %1743 }
 0xb1b   :  { %762 = vrot.lane.b32.xlu0 %v1744_v8, %s1781_s4 }
 0xb8d   :  { %v763_v30 = vpop.permute.xlu0 %762 }
 0xb8e   :  { %v765_v31 = vmul.f32 %v1742_v23, %v763_v30 }
 0xb90   :  { %767 = vrot.lane.b32.xlu1 %v765_v31, %s1782_s10 }
 0xc02   :  { %v768_v33 = vpop.permute.xlu1 %767 }
 0xc03   :  { %1570 = vmatmul.mubr.msk.f32.vlgmr.msra.gmra.mrb[12].mxu1 %vm43_vm1, %v768_v33 }
 0xc04   :  { %1683 = vmatpush3.bf16.msra.mxu1 %v1922_v27  ;;  %1591 = vmatprep.mubr.msk.f32.mxu1 %vm1778_vm0, %v1779_v4 }
 0xc05   :  { %1684 = vmatprep.subr.bf16.mxu1 %v1777_v0 }
 0xc08   :  { %1686 = vmatpush3.bf16.msra.mxu1 %v1935_v32 }
 0xc09   :  { %1693 = vmatprep.subr.bf16.mxu1 %v1777_v0 }
 0xcd6   :  { %v837_v34 = vpop.f32.mrb[12].mxu1 }
 0xcd7   :  { %v841_v35 = vadd.f32 %v837_v34, %v1985_v14  ;;  %v1571_v36 = vpop.f32.mrb[13].mxu1 }
 0xcd8   :  { %v1167_v36 = vld [vmem:[%s2112_s5 + $0x8] sm:$0xff] }
 0xcd9   :  { %1745 = vtanh.f32 %v841_v35  ;;  %v1375_v38 = vmul.f32 -1.442695, %v841_v35 }
 0xcdb   :  { %1747 = vpow2.f32 %v1375_v38 }
 0xce3   :  { %v1746_v37 = vpop.eup %1745 }
 0xce4   :  { %851 = vrot.lane.b32.xlu0 %v1746_v37, %s1781_s4  ;;  %v1168_v37 = vld [vmem:[%s2112_s5 + $0x10] sm:$0xff] }
 0xce5   :  { %v1748_v39 = vpop.eup %1747 }
 0xce6   :  { %v845_v40 = vadd.f32 1.0, %v1748_v39  ;;  %v1169_v39 = vld [vmem:[%s2112_s5 + $0x18] sm:$0xff] }
 0xce8   :  { %1749 = vrcp.f32 %v845_v40  ;;  %v1697_v40 = vpack.c.bf16 %v1169_v39, %v1168_v37 }
 0xcf2   :  { %v1750_v41 = vpop.eup %1749 }
 0xcf3   :  { %v849_v44 = vmul.f32 %v1750_v41, %v759_v29 }
 0xd56   :  { %v852_v42 = vpop.permute.xlu0 %851 }
 0xd57   :  { %v854_v43 = vmul.f32 %v1750_v41, %v852_v42  ;;  %v1253_v42 = vld [vmem:[%s2113_s7] sm:$0xff] }
 0xd59   :  { %856 = vrot.lane.b32.xlu1 %v854_v43, %s1782_s10  ;;  %v1254_v43 = vld [vmem:[%s2113_s7 + $0x8] sm:$0xff] }
 0xdcb   :  { %v857_v45 = vpop.permute.xlu1 %856 }
 0xdcc   :  { %v859_v46 = vadd.f32 %v857_v45, %v849_v44  ;;  %v1700_v44 = vpack.c.bf16 %v1254_v43, %v1253_v42 }
 0xdce   :  { %1751 = vtanh.f32 %v859_v46 }
 0xdd8   :  { %v1752_v14 = vpop.eup %1751 }
 0xdd9   :  { %862 = vrot.lane.b32.xlu0 %v1752_v14, %s1781_s4 }
 0xe4b   :  { %v863_v47 = vpop.permute.xlu0 %862 }
 0xe4c   :  { %v865_v48 = vmul.f32 %v1750_v41, %v863_v47  ;;  %v1255_v47 = vld [vmem:[%s2113_s7 + $0x10] sm:$0xff] }
 0xe4e   :  { %867 = vrot.lane.b32.xlu1 %v865_v48, %s1782_s10  ;;  %v1256_v48 = vld [vmem:[%s2113_s7 + $0x18] sm:$0xff] }
 0xec0   :  { %v868_v49 = vpop.permute.xlu1 %867 }
 0xec1   :  { %1581 = vmatmul.mubr.msk.f32.vlgmr.msra.gmra.mrb[18].mxu0 %vm43_vm1, %v868_v49  ;;  %v1703_v49 = vpack.c.bf16 %v1256_v48, %v1255_v47 }
 0xec2   :  { %1689 = vmatpush3.bf16.msra.mxu0 %v1922_v27  ;;  %1602 = vmatprep.mubr.msk.f32.mxu0 %vm1778_vm0, %v1779_v4 }
 0xec3   :  { %1690 = vmatprep.subr.bf16.mxu0 %v1777_v0 }
 0xec6   :  { %1692 = vmatpush3.bf16.msra.mxu0 %v1935_v32 }
 0xec7   :  { %1699 = vmatprep.subr.bf16.mxu0 %v1777_v0 }
 0xf94   :  { %v937_v50 = vpop.f32.mrb[18].mxu0 }
 0xf95   :  { %v941_v51 = vadd.f32 %v937_v50, %v1983_v12  ;;  %v1582_v52 = vpop.f32.mrb[19].mxu0 }
 0xf97   :  { %1753 = vtanh.f32 %v941_v51  ;;  %v1377_v54 = vmul.f32 -1.442695, %v941_v51 }
 0xf99   :  { %1755 = vpow2.f32 %v1377_v54  ;;  %v1384_v54 = vld [vmem:[%s2115_s8] ss:$0 sm:$0xff] }
 0xfa1   :  { %v1754_v53 = vpop.eup %1753 }
 0xfa2   :  { %951 = vrot.lane.b32.xlu0 %v1754_v53, %s1781_s4 }
 0xfa3   :  { %v1756_v27 = vpop.eup %1755 }
 0xfa4   :  { %v945_v55 = vadd.f32 1.0, %v1756_v27 }
 0xfa6   :  { %1757 = vrcp.f32 %v945_v55 }
 0xfb0   :  { %v1758_v56 = vpop.eup %1757 }
 0xfb1   :  { %v949_v32 = vmul.f32 %v1758_v56, %v859_v46 }
0x1014   :  { %v952_v57 = vpop.permute.xlu0 %951 }
0x1015   :  { %v954_v58 = vmul.f32 %v1758_v56, %v952_v57 }
0x1017   :  { %956 = vrot.lane.b32.xlu1 %v954_v58, %s1782_s10 }
0x1089   :  { %v957_v59 = vpop.permute.xlu1 %956 }
0x108a   :  { %v959_v60 = vadd.f32 %v957_v59, %v949_v32 }
0x108c   :  { %1759 = vtanh.f32 %v959_v60 }
0x1096   :  { %v1760_v12 = vpop.eup %1759 }
0x1097   :  { %962 = vrot.lane.b32.xlu0 %v1760_v12, %s1781_s4 }
0x1109   :  { %v963_v61 = vpop.permute.xlu0 %962 }
0x110a   :  { %v965_v62 = vmul.f32 %v1758_v56, %v963_v61 }
0x110c   :  { %967 = vrot.lane.b32.xlu1 %v965_v62, %s1782_s10 }
0x117e   :  { %v968_v63 = vpop.permute.xlu1 %967 }
0x117f   :  { %1592 = vmatmul.mubr.msk.f32.vlgmr.msra.gmra.mrb[14].mxu1 %vm43_vm1, %v968_v63 }
0x1180   :  { %1613 = vmatprep.mubr.msk.f32.mxu1 %vm1778_vm0, %v1779_v4 }
0x1252   :  { %v1037_v1 = vpop.f32.mrb[14].mxu1 }
0x1253   :  { %v1041_v2 = vadd.f32 %v1037_v1, %v1989_v18  ;;  %v1593_v3 = vpop.f32.mrb[15].mxu1 }
0x1255   :  { %1761 = vtanh.f32 %v1041_v2  ;;  %v1379_v6 = vmul.f32 -1.442695, %v1041_v2 }
0x1257   :  { %1763 = vpow2.f32 %v1379_v6 }
0x125f   :  { %v1762_v5 = vpop.eup %1761 }
0x1260   :  { %1051 = vrot.lane.b32.xlu0 %v1762_v5, %s1781_s4 }
0x1261   :  { %v1764_v7 = vpop.eup %1763 }
0x1262   :  { %v1045_v9 = vadd.f32 1.0, %v1764_v7 }
0x1264   :  { %1765 = vrcp.f32 %v1045_v9 }
0x126e   :  { %v1766_v10 = vpop.eup %1765 }
0x126f   :  { %v1049_v15 = vmul.f32 %v1766_v10, %v959_v60 }
0x12d2   :  { %v1052_v11 = vpop.permute.xlu0 %1051 }
0x12d3   :  { %v1054_v13 = vmul.f32 %v1766_v10, %v1052_v11 }
0x12d5   :  { %1056 = vrot.lane.b32.xlu1 %v1054_v13, %s1782_s10 }
0x1347   :  { %v1057_v17 = vpop.permute.xlu1 %1056 }
0x1348   :  { %v1059_v19 = vadd.f32 %v1057_v17, %v1049_v15 }
0x134a   :  { %1767 = vtanh.f32 %v1059_v19 }
0x1354   :  { %v1768_v18 = vpop.eup %1767 }
0x1355   :  { %1062 = vrot.lane.b32.xlu0 %v1768_v18, %s1781_s4 }
0x13c7   :  { %v1063_v20 = vpop.permute.xlu0 %1062 }
0x13c8   :  { %v1065_v21 = vmul.f32 %v1766_v10, %v1063_v20 }
0x13ca   :  { %1067 = vrot.lane.b32.xlu1 %v1065_v21, %s1782_s10 }
0x143c   :  { %v1068_v22 = vpop.permute.xlu1 %1067 }
0x143d   :  { %1603 = vmatmul.mubr.msk.f32.vlgmr.msra.gmra.mrb[20].mxu0 %vm43_vm1, %v1068_v22 }
0x143e   :  { %1624 = vmatprep.mubr.msk.f32.mxu0 %vm1778_vm0, %v1779_v4  ;;  %1701 = vmatpush3.bf16.msra.mxu0 %v1700_v44 }
0x143f   :  { %1702 = vmatprep.subr.bf16.mxu0 %v1777_v0 }
0x1442   :  { %1704 = vmatpush3.bf16.msra.mxu0 %v1703_v49 }
0x1510   :  { %v1137_v23 = vpop.f32.mrb[20].mxu0 }
0x1511   :  { %v1141_v24 = vadd.f32 %v1137_v23, %v1987_v16  ;;  %v1604_v25 = vpop.f32.mrb[21].mxu0  ;;  %v1166_v16 = vld [vmem:[%s2112_s5] sm:$0xff] }
0x1512   :  { %v1694_v38 = vpack.c.bf16 %v1167_v36, %v1166_v16 }
0x1513   :  { %1769 = vtanh.f32 %v1141_v24  ;;  %v1381_v28 = vmul.f32 -1.442695, %v1141_v24 }
0x1514   :  { %1695 = vmatpush3.bf16.msra.mxu1 %v1694_v38 }
0x1515   :  { %1771 = vpow2.f32 %v1381_v28  ;;  %1696 = vmatprep.subr.bf16.mxu1 %v1777_v0  ;;  %v1382_v0 = vld [vmem:[%s2114_s6] ss:$0 sm:$0xff] }
0x1518   :  { %1698 = vmatpush3.bf16.msra.mxu1 %v1697_v40 }
0x151d   :  { %v1770_v26 = vpop.eup %1769 }
0x151e   :  { %1151 = vrot.lane.b32.xlu0 %v1770_v26, %s1781_s4 }
0x151f   :  { %v1772_v29 = vpop.eup %1771 }
0x1520   :  { %v1145_v8 = vadd.f32 1.0, %v1772_v29 }
0x1522   :  { %1773 = vrcp.f32 %v1145_v8 }
0x152c   :  { %v1774_v30 = vpop.eup %1773 }
0x152d   :  { %v1149_v34 = vmul.f32 %v1774_v30, %v1059_v19 }
0x1590   :  { %v1152_v31 = vpop.permute.xlu0 %1151 }
0x1591   :  { %v1154_v33 = vmul.f32 %v1774_v30, %v1152_v31 }
0x1593   :  { %1156 = vrot.lane.b32.xlu1 %v1154_v33, %s1782_s10 }
0x1605   :  { %v1157_v4 = vpop.permute.xlu1 %1156 }
0x1606   :  { %v1159_v35 = vadd.f32 %v1157_v4, %v1149_v34 }
0x1608   :  { %1775 = vtanh.f32 %v1159_v35 }
0x1612   :  { %v1776_v41 = vpop.eup %1775 }
0x1613   :  { %1162 = vrot.lane.b32.xlu0 %v1776_v41, %s1781_s4 }
0x1685   :  { %v1163_v45 = vpop.permute.xlu0 %1162 }
0x1686   :  { %v1165_v46 = vmul.f32 %v1774_v30, %v1163_v45 }
0x1688   :  { %1178 = vrot.lane.b32.xlu1 %v1165_v46, %s1782_s10 }
0x16fa   :  { %v1179_v14 = vpop.permute.xlu1 %1178 }
0x16fb   :  { %1614 = vmatmul.mubr.msk.f32.vlgmr.msra.gmra.mrb[16].mxu1 %vm43_vm1, %v1179_v14 }
0x17ce   :  { %v1248_v50 = vpop.f32.mrb[16].mxu1 }
0x17cf   :  { %v1249_v51 = vadd.f32 %v1382_v0, %v1248_v50  ;;  %v1615_v52 = vpop.f32.mrb[17].mxu1 }
0x17d1   :  { %v1252_v53 = vmax.f32 %v1249_v51, 0.0 }
0x17d3   :  { %1625 = vmatmul.mubr.msk.f32.vlgmr.msra.gmra.mrb[22].mxu0 %vm43_vm1, %v1252_v53 }
0x18a6   :  { %v1333_v27 = vpop.f32.mrb[22].mxu0 }
0x18a7   :  { %v1334_v55 = vadd.f32 %v1384_v54, %v1333_v27  ;;  %v1626_v56 = vpop.f32.mrb[23].mxu0 }
0x18a9   :  { %1337 = vst [vmem:[%s2116_s9] sm:$0xff] %v1334_v55 }

</bundles_post_ra>
